<compile_context>
chip_gen: v6e
topology: v6e:2x2x1
jax: 0.10.0
libtpu: 0.0.40
codegen_flags: <defaults>
</compile_context>

<pallas_src>
import jax
import jax.numpy as jnp
from jax.experimental import pallas as pl
from jax.experimental.pallas import tpu as pltpu


def _round_up(x, m):
    return ((x + m - 1) // m) * m


def _choose_tile_n(num_nodes, f_pad):
    """Largest node tile whose double-buffered (tile_n, f_pad) f32 slab stays
    well inside scoped VMEM on v5e/v6e/v7x, capped at 1024 rows to keep the
    (G, tile_n) one-hot + accumulator vreg pressure modest."""
    budget = 8 * 1024 * 1024           # ~4 MiB per buffer, double-buffered
    tile = 1024
    while tile > 128 and 2 * tile * f_pad * 4 > budget:
        tile //= 2
    # Do not over-pad tiny inputs: never exceed round_up(N, 128).
    return min(tile, _round_up(max(num_nodes, 1), 128))


def _linear_graph_predictor_kernel(batch_ref, x_ref, w_ref, b_ref,
                                   out_ref, pooled_ref, acc_ref):
    # batch_ref : (1, TILE_N)  int32 graph id per node (padded ids >= G)
    # x_ref     : (TILE_N, F)  f32 node-feature tile
    # w_ref     : (T, F)       f32 PyTorch Linear weight (not transposed)
    # b_ref     : (1, T)       f32 bias
    # out_ref   : (G, T)       f32 (resident across the grid)
    # pooled_ref: (G, F)       f32 (resident across the grid)
    # acc_ref   : (G, F)       f32 VMEM scratch accumulator
    k = pl.program_id(0)

    @pl.when(k == 0)
    def _():
        acc_ref[...] = jnp.zeros_like(acc_ref)

    g = acc_ref.shape[0]
    tile_n = x_ref.shape[0]

    batch = batch_ref[...]                                    # (1, TILE_N)
    gid = jax.lax.broadcasted_iota(jnp.int32, (g, tile_n), 0)  # (G, TILE_N)
    # one-hot segment matrix for this node tile: padded node ids (>= G) give
    # an all-zero column, so padded rows contribute nothing.
    onehot = (gid == batch).astype(jnp.float32)               # (G, TILE_N)

    # segment-sum for this tile on the MXU: acc += onehot @ x_tile
    acc_ref[...] += jnp.dot(onehot, x_ref[...],
                            preferred_element_type=jnp.float32)

    @pl.when(k == pl.num_programs(0) - 1)
    def _():
        pooled = acc_ref[...]
        pooled_ref[...] = pooled
        # Linear: pooled (G, F) @ W (T, F) contracting F on both -> (G, T)
        out_ref[...] = jax.lax.dot_general(
            pooled, w_ref[...],
            dimension_numbers=(((1,), (1,)), ((), ())),
            preferred_element_type=jnp.float32) + b_ref[...]


def linear_graph_predictor(x, batch, weight, bias, num_graphs):
    """x: (N, F) float, batch: (N,) int graph ids, weight: (T, F) (PyTorch
    Linear layout), bias: (T,). Returns (out (G, T), pooled (G, F)).

    Note: nodes with batch id outside [0, num_graphs) are dropped, matching
    jax.ops.segment_sum(num_segments=num_graphs)."""
    n_nodes, dim_f = x.shape
    dim_t = weight.shape[0]

    f_pad = _round_up(max(dim_f, 1), 128)
    t_pad = _round_up(max(dim_t, 1), 128)
    g_pad = _round_up(max(num_graphs, 1), 8)

    tile_n = _choose_tile_n(n_nodes, f_pad)
    n_pad = _round_up(max(n_nodes, 1), tile_n)
    num_tiles = n_pad // tile_n

    # Zero-pad inputs (zeros contribute nothing to either matmul); padded
    # node slots get graph id g_pad (out of iota range) so their one-hot
    # column is all zero.
    x_p = jnp.zeros((n_pad, f_pad), jnp.float32)
    x_p = x_p.at[:n_nodes, :dim_f].set(x.astype(jnp.float32))
    batch_p = jnp.full((1, n_pad), g_pad, jnp.int32)
    batch_p = batch_p.at[0, :n_nodes].set(batch.astype(jnp.int32))
    w_p = jnp.zeros((t_pad, f_pad), jnp.float32)
    w_p = w_p.at[:dim_t, :dim_f].set(weight.astype(jnp.float32))
    b_p = jnp.zeros((1, t_pad), jnp.float32)
    b_p = b_p.at[0, :dim_t].set(bias.astype(jnp.float32))

    out_shapes = (
        jax.ShapeDtypeStruct((g_pad, t_pad), jnp.float32),
        jax.ShapeDtypeStruct((g_pad, f_pad), jnp.float32),
    )

    # VMEM budget: double-buffered x/batch tiles + resident W/b + resident
    # outputs + accumulator + one-hot temp, with 2x headroom (capped at the
    # 64 MiB physical VMEM of v7x so the same limit is valid on all chips).
    vmem_need = (
        2 * (tile_n * f_pad * 4 + tile_n * 4)
        + 2 * (t_pad * f_pad * 4 + t_pad * 4)
        + 2 * g_pad * f_pad * 4
        + g_pad * t_pad * 4
        + g_pad * tile_n * 4
    )
    vmem_limit = min(max(2 * vmem_need, 32 * 1024 * 1024), 64 * 1024 * 1024)

    cost = pl.CostEstimate(
        flops=2 * g_pad * n_pad * f_pad + 2 * g_pad * f_pad * t_pad,
        transcendentals=0,
        bytes_accessed=(n_pad * f_pad * 4 + n_pad * 4 + t_pad * f_pad * 4
                        + t_pad * 4 + g_pad * f_pad * 4 + g_pad * t_pad * 4),
    )

    out_p, pooled_p = pl.pallas_call(
        _linear_graph_predictor_kernel,
        out_shape=out_shapes,
        grid_spec=pltpu.PrefetchScalarGridSpec(
            num_scalar_prefetch=0,
            grid=(num_tiles,),
            in_specs=[
                pl.BlockSpec((1, tile_n), lambda k: (0, k)),       # batch ids
                pl.BlockSpec((tile_n, f_pad), lambda k: (k, 0)),   # x tile
                pl.BlockSpec((t_pad, f_pad), lambda k: (0, 0)),    # W (T, F)
                pl.BlockSpec((1, t_pad), lambda k: (0, 0)),        # bias
            ],
            out_specs=[
                pl.BlockSpec((g_pad, t_pad), lambda k: (0, 0)),    # out
                pl.BlockSpec((g_pad, f_pad), lambda k: (0, 0)),    # pooled
            ],
            scratch_shapes=[pltpu.VMEM((g_pad, f_pad), jnp.float32)],
        ),
        compiler_params=pltpu.CompilerParams(
            dimension_semantics=("arbitrary",),   # node axis is a reduction
            vmem_limit_bytes=vmem_limit,
        ),
        cost_estimate=cost,
    )(batch_p, x_p, w_p, b_p)

    return out_p[:num_graphs, :dim_t], pooled_p[:num_graphs, :dim_f]


if __name__ == "__main__":
    key = jax.random.PRNGKey(0)
    k_x, k_w, k_b = jax.random.split(key, 3)

    # Small synthetic graph batch: 16 nodes, 8 node features, 2 graphs, 4 targets.
    num_nodes = 16
    dim_node_features = 8
    dim_target = 4
    num_graphs = 2

    x = jax.random.normal(k_x, (num_nodes, dim_node_features), dtype=jnp.float32)
    # first 10 nodes -> graph 0, last 6 -> graph 1
    batch = jnp.concatenate([jnp.zeros((10,), jnp.int32),
                             jnp.ones((6,), jnp.int32)])

    # Deterministic parameters matching nn.Linear(F, T) shapes.
    weight = jax.random.normal(k_w, (dim_target, dim_node_features),
                               dtype=jnp.float32) * 0.1
    bias = jax.random.normal(k_b, (dim_target,), dtype=jnp.float32) * 0.1

    out, pooled = linear_graph_predictor(x, batch, weight, bias, num_graphs)
    jax.block_until_ready(out)
    jax.block_until_ready(pooled)

    # Reference check in plain JAX.
    pooled_ref = jax.ops.segment_sum(x, batch, num_segments=num_graphs)
    out_ref = pooled_ref @ weight.T + bias
    assert jnp.allclose(pooled, pooled_ref, atol=1e-5), "pooled mismatch"
    assert jnp.allclose(out, out_ref, atol=1e-5), "linear output mismatch"

    print("KERNEL_OK")
</pallas_src>

<mosaic_0001>
module attributes {stable_mosaic.version = 11 : i64} {
  func.func @_linear_graph_predictor_kernel(%arg0: i32, %arg1: memref<1x128xi32, #tpu.memory_space<vmem>>, %arg2: memref<128x128xf32, #tpu.memory_space<vmem>>, %arg3: memref<128x128xf32, #tpu.memory_space<vmem>>, %arg4: memref<1x128xf32, #tpu.memory_space<vmem>>, %arg5: memref<8x128xf32, #tpu.memory_space<vmem>>, %arg6: memref<8x128xf32, #tpu.memory_space<vmem>>, %arg7: memref<8x128xf32, #tpu.memory_space<vmem>>) attributes {dimension_semantics = [#tpu.dimension_semantics<arbitrary>], iteration_bounds = array<i64: 1>, scalar_prefetch = 0 : i64, scratch_operands = 1 : i64, tpu.core_type = #tpu.core_type<tc>, window_params = [{transform_indices = @transform_0, window_bounds = array<i64: 1, 128>}, {transform_indices = @transform_1, window_bounds = array<i64: 128, 128>}, {pipeline_mode = #tpu.pipeline_mode<synchronous>, transform_indices = @transform_2, window_bounds = array<i64: 128, 128>}, {pipeline_mode = #tpu.pipeline_mode<synchronous>, transform_indices = @transform_3, window_bounds = array<i64: 1, 128>}, {pipeline_mode = #tpu.pipeline_mode<synchronous>, transform_indices = @transform_4, window_bounds = array<i64: 8, 128>}, {pipeline_mode = #tpu.pipeline_mode<synchronous>, transform_indices = @transform_5, window_bounds = array<i64: 8, 128>}]} {
    %c0_i32 = arith.constant 0 : i32
    %0 = arith.cmpi eq, %arg0, %c0_i32 : i32
    %1 = arith.extui %0 : i1 to i32
    %c0_i32_0 = arith.constant 0 : i32
    %2 = arith.cmpi ne, %1, %c0_i32_0 : i32
    scf.if %2 {
      %cst_10 = arith.constant 0.000000e+00 : f32
      %17 = vector.broadcast %cst_10 : f32 to vector<8x128xf32>
      %c0_11 = arith.constant 0 : index
      %c0_12 = arith.constant 0 : index
      %18 = vector.load %arg7[%c0_11, %c0_12] : memref<8x128xf32, #tpu.memory_space<vmem>>, vector<8x128xf32>
      tpu.vector_store %arg7[%c0_11, %c0_12], %17 {strides = array<i32>} : memref<8x128xf32, #tpu.memory_space<vmem>>, vector<8x128xf32>,
    } else {
    }
    %c0 = arith.constant 0 : index
    %c0_1 = arith.constant 0 : index
    %3 = vector.load %arg1[%c0, %c0_1] : memref<1x128xi32, #tpu.memory_space<vmem>>, vector<1x128xi32>
    %4 = tpu.iota {dimensions = array<i32: 0>} : vector<8x128xi32>
    %5 = vector.broadcast %3 : vector<1x128xi32> to vector<8x128xi32>
    %6 = arith.cmpi eq, %4, %5 : vector<8x128xi32>
    %7 = arith.extui %6 : vector<8x128xi1> to vector<8x128xi32>
    %8 = arith.sitofp %7 : vector<8x128xi32> to vector<8x128xf32>
    %c0_2 = arith.constant 0 : index
    %c0_3 = arith.constant 0 : index
    %9 = vector.load %arg7[%c0_2, %c0_3] : memref<8x128xf32, #tpu.memory_space<vmem>>, vector<8x128xf32>
    %c0_4 = arith.constant 0 : index
    %c0_5 = arith.constant 0 : index
    %10 = vector.load %arg2[%c0_4, %c0_5] : memref<128x128xf32, #tpu.memory_space<vmem>>, vector<128x128xf32>
    %cst = arith.constant dense<0.000000e+00> : vector<8x128xf32>
    %11 = tpu.matmul %8, %10, %cst {dimension_numbers = #tpu.dot_dimension_numbers<[1], [0], [0], [1], [0, 0, 1, 1], [], []>} : vector<8x128xf32>, vector<128x128xf32>, vector<8x128xf32> -> vector<8x128xf32>
    %12 = arith.addf %9, %11 : vector<8x128xf32>
    %c0_6 = arith.constant 0 : index
    %c0_7 = arith.constant 0 : index
    %13 = vector.load %arg7[%c0_6, %c0_7] : memref<8x128xf32, #tpu.memory_space<vmem>>, vector<8x128xf32>
    tpu.vector_store %arg7[%c0_6, %c0_7], %12 {strides = array<i32>} : memref<8x128xf32, #tpu.memory_space<vmem>>, vector<8x128xf32>,
    %c0_i32_8 = arith.constant 0 : i32
    %14 = arith.cmpi eq, %arg0, %c0_i32_8 : i32
    %15 = arith.extui %14 : i1 to i32
    %c0_i32_9 = arith.constant 0 : i32
    %16 = arith.cmpi ne, %15, %c0_i32_9 : i32
    scf.if %16 {
      %c0_10 = arith.constant 0 : index
      %c0_11 = arith.constant 0 : index
      %17 = vector.load %arg7[%c0_10, %c0_11] : memref<8x128xf32, #tpu.memory_space<vmem>>, vector<8x128xf32>
      %c0_12 = arith.constant 0 : index
      %c0_13 = arith.constant 0 : index
      %18 = vector.load %arg6[%c0_12, %c0_13] : memref<8x128xf32, #tpu.memory_space<vmem>>, vector<8x128xf32>
      tpu.vector_store %arg6[%c0_12, %c0_13], %17 {strides = array<i32>} : memref<8x128xf32, #tpu.memory_space<vmem>>, vector<8x128xf32>,
      %c0_14 = arith.constant 0 : index
      %c0_15 = arith.constant 0 : index
      %19 = vector.load %arg3[%c0_14, %c0_15] : memref<128x128xf32, #tpu.memory_space<vmem>>, vector<128x128xf32>
      %cst_16 = arith.constant dense<0.000000e+00> : vector<8x128xf32>
      %20 = tpu.matmul %17, %19, %cst_16 {dimension_numbers = #tpu.dot_dimension_numbers<[1], [1], [0], [0], [0, 0, 1, 0], [], []>} : vector<8x128xf32>, vector<128x128xf32>, vector<8x128xf32> -> vector<8x128xf32>
      %c0_17 = arith.constant 0 : index
      %c0_18 = arith.constant 0 : index
      %21 = vector.load %arg4[%c0_17, %c0_18] : memref<1x128xf32, #tpu.memory_space<vmem>>, vector<1x128xf32>
      %22 = vector.broadcast %21 : vector<1x128xf32> to vector<8x128xf32>
      %23 = arith.addf %20, %22 : vector<8x128xf32>
      %c0_19 = arith.constant 0 : index
      %c0_20 = arith.constant 0 : index
      %24 = vector.load %arg5[%c0_19, %c0_20] : memref<8x128xf32, #tpu.memory_space<vmem>>, vector<8x128xf32>
      tpu.vector_store %arg5[%c0_19, %c0_20], %23 {strides = array<i32>} : memref<8x128xf32, #tpu.memory_space<vmem>>, vector<8x128xf32>,
    } else {
    }
    return
  }
  func.func @transform_0(%arg0: i32) -> (i32, i32) {
    %c0_i32 = arith.constant 0 : i32
    %c0_i32_0 = arith.constant 0 : i32
    return %c0_i32, %arg0 : i32, i32
  }
  func.func @transform_1(%arg0: i32) -> (i32, i32) {
    %c0_i32 = arith.constant 0 : i32
    %c0_i32_0 = arith.constant 0 : i32
    return %arg0, %c0_i32 : i32, i32
  }
  func.func @transform_2(%arg0: i32) -> (i32, i32) {
    %c0_i32 = arith.constant 0 : i32
    %c0_i32_0 = arith.constant 0 : i32
    %c0_i32_1 = arith.constant 0 : i32
    return %c0_i32, %c0_i32_0 : i32, i32
  }
  func.func @transform_3(%arg0: i32) -> (i32, i32) {
    %c0_i32 = arith.constant 0 : i32
    %c0_i32_0 = arith.constant 0 : i32
    %c0_i32_1 = arith.constant 0 : i32
    return %c0_i32, %c0_i32_0 : i32, i32
  }
  func.func @transform_4(%arg0: i32) -> (i32, i32) {
    %c0_i32 = arith.constant 0 : i32
    %c0_i32_0 = arith.constant 0 : i32
    %c0_i32_1 = arith.constant 0 : i32
    return %c0_i32, %c0_i32_0 : i32, i32
  }
  func.func @transform_5(%arg0: i32) -> (i32, i32) {
    %c0_i32 = arith.constant 0 : i32
    %c0_i32_0 = arith.constant 0 : i32
    %c0_i32_1 = arith.constant 0 : i32
    return %c0_i32, %c0_i32_0 : i32, i32
  }
}

</mosaic_0001>

<bundles_post_ra>
// kernel: tpu_custom_call.1
= control target key start
LH: loop header
LB: loop body
LE: loop exit
PB: predicated region body
PF: predicated region fallthrough
CT: control target
= control target key end

     0   :  { %11 = vsyncpa [#allocation4], 0  ;;  %s611_s0 = inlined_call_operand.hbm [shape: s32[1,128], index: 0, kind: input, shape index: {}]   ;;  %s612_s1 = inlined_call_operand.hbm [shape: f32[128,128], index: 1, kind: input, shape index: {}]   ;;  %s613_s2 = inlined_call_operand.hbm [shape: f32[128,128], index: 2, kind: input, shape index: {}]   ;;  %s614_s3 = inlined_call_operand.vmem [shape: f32[1,128], index: 3, kind: input, shape index: {}]   ;;  %s615_s4 = inlined_call_operand.hbm [shape: f32[8,128], index: 4, kind: output, shape index: {0}]   ;;  %s616_s5 = inlined_call_operand.hbm [shape: f32[8,128], index: 5, kind: output, shape index: {1}]  }
   0x1   :  { %12 = vsyncpa [#allocation7], 0 }
   0x2   :  { %13 = vsyncpa [#allocation5], 0 }
   0x3   :  { %14 = vsyncpa [#allocation11], 0  ;;  %s519_s18 = smov [#allocation6]  }
   0x4   :  { %s30_s19 = sshll.u32 %s519_s18, 4  ;;  %s31_s19 = int_to_ptr.vmem [resolvable:$true] %s30_s19 }
   0x5   :  { %s419_s20 = scalar_lea.vmem %s31_s19, 2048  ;;  %p424_p1 = scmp.lt.s32.totalorder %s31_s19, %s31_s19 }
   0x6   :  { %p420_p0 = scmp.ne.s32.totalorder %s31_s19, %s419_s20  ;;  %p425_p2 = scmp.lt.s32.totalorder %s419_s20, %s419_s20 }
   0x8   :  { %p426_p3 = por %p425_p2, %p424_p1 }
   0xa   :  { %p427_p4 = pnand %p426_p3, %p420_p0 }
   0xc   :  { %430 = shalt.err (!%p427_p4)
}
   0xd   :  { %s520_s21 = smov 128   ;;  %s521_s22 = smov 8  }
   0xe   :  { %36 = dma.hbm_to_vmem [thread:$0]  %s612_s1, 2048, %s31_s19, [#allocation7], %s520_s21, %s520_s21, %s521_s22  }
   0xf   :  { %s522_s25 = smov [#allocation3]   ;;  %s523_s27 = smov [#allocation8]  }
  0x10   :  { %s21_s26 = sshll.u32 %s522_s25, 4  ;;  %s42_s28 = sshll.u32 %s523_s27, 4  ;;  %s22_s26 = int_to_ptr.vmem [resolvable:$true] %s21_s26  ;;  %s43_s28 = int_to_ptr.vmem [resolvable:$true] %s42_s28 }
  0x11   :  { %s439_s29 = scalar_lea.vmem %s22_s26, 16  ;;  %s443_s30 = scalar_lea.vmem %s22_s26, 32 }
  0x12   :  { %p440_p5 = scmp.ne.s32.totalorder %s22_s26, %s439_s29  ;;  %p444_p6 = scmp.lt.s32.totalorder %s22_s26, %s22_s26 }
  0x13   :  { %p445_p7 = scmp.lt.s32.totalorder %s443_s30, %s439_s29 }
  0x15   :  { %p446_p8 = por %p445_p7, %p444_p6 }
  0x17   :  { %p447_p9 = pnand %p446_p8, %p440_p5 }
  0x19   :  { %450 = shalt.err (!%p447_p9)
}
  0x1a   :  { %24 = dma.hbm_to_vmem [thread:$0]  %s611_s0, 16, %s22_s26, [#allocation4]  }
  0x1b   :  { %s459_s8 = scalar_lea.vmem %s43_s28, 2048  ;;  %p464_p11 = scmp.lt.s32.totalorder %s43_s28, %s43_s28 }
  0x1c   :  { %p460_p10 = scmp.ne.s32.totalorder %s43_s28, %s459_s8  ;;  %p465_p12 = scmp.lt.s32.totalorder %s459_s8, %s459_s8 }
  0x1e   :  { %p466_p13 = por %p465_p12, %p464_p11 }
  0x20   :  { %p467_p0 = pnand %p466_p13, %p460_p10 }
  0x22   :  { %470 = shalt.err (!%p467_p0)
}
  0x23   :  { %48 = dma.hbm_to_vmem [thread:$0]  %s613_s2, 2048, %s43_s28, [#allocation7], %s520_s21, %s520_s21, %s521_s22  }
  0x24   :  { %511 = dma.done.wait [#allocation4], 16  }
  0x25   :  { %512 = vsyncadd [#allocation4], 4294967280 }
  0x26   :  { %513 = dma.done.wait [#allocation7], 4096  }
  0x27   :  { %514 = vsyncadd [#allocation7], 4294963200  ;;  %v524_v0 = vmov 0.0   ;;  %vm525_vm0 = vmmov 0   ;;  %v91_v1 = vld [vmem:[#allocation6 + $0x78] sm:$0xff]  ;;  %v90_v2 = vld [vmem:[#allocation6 + $0x70] sm:$0xff]  ;;  %v66_v18 = vlaneseq }
  0x28   :  { %331 = vmatprep.subr.mxu0 %v524_v0  ;;  %363 = vmatprep.mubr.msk.f32.mxu0 %vm525_vm0, %v524_v0  ;;  %v89_v3 = vld [vmem:[#allocation6 + $0x68] sm:$0xff]  ;;  %v88_v4 = vld [vmem:[#allocation6 + $0x60] sm:$0xff]  ;;  %v184_v5 = vld [vmem:[#allocation8 + $0x78] sm:$0xff]  ;;  %v526_v28 = vmov 1.0   ;;  %s527_s0 = smov [#allocation10]  }
  0x29   :  { %366 = vmatprep.subr.mxu1 %v524_v0  ;;  %398 = vmatprep.mubr.msk.f32.mxu1 %vm525_vm0, %v524_v0  ;;  %v87_v6 = vld [vmem:[#allocation6 + $0x58] sm:$0xff]  ;;  %v183_v7 = vld [vmem:[#allocation8 + $0x70] sm:$0xff]  ;;  %v85_v9 = vld [vmem:[#allocation6 + $0x48] sm:$0xff]  ;;  %v67_v22 = vshrl.u32 %v66_v18, 7  ;;  %s279_s2 = sshll.u32 %s527_s0, 4  ;;  %s280_s2 = int_to_ptr.vmem [resolvable:$true] %s279_s2 }
  0x2a   :  { %332 = vmatpush3.msra.mxu0 %v91_v1  ;;  %367 = vmatpush3.xpose.msra.mxu1 %v184_v5  ;;  %v86_v8 = vld [vmem:[#allocation6 + $0x50] sm:$0xff]  ;;  %v182_v10 = vld [vmem:[#allocation8 + $0x68] sm:$0xff]  ;;  %v84_v11 = vld [vmem:[#allocation6 + $0x40] sm:$0xff]  ;;  %s471_s10 = scalar_lea.vmem %s280_s2, 128  ;;  %p476_p2 = scmp.lt.s32.totalorder %s280_s2, %s280_s2 }
  0x2b   :  { %333 = vmatprep.subr.mxu0 %v524_v0  ;;  %368 = vmatprep.subr.mxu1 %v524_v0  ;;  %v83_v12 = vld [vmem:[#allocation6 + $0x38] sm:$0xff]  ;;  %v181_v13 = vld [vmem:[#allocation8 + $0x60] sm:$0xff]  ;;  %v82_v14 = vld [vmem:[#allocation6 + $0x30] sm:$0xff]  ;;  %p472_p1 = scmp.ne.s32.totalorder %s280_s2, %s471_s10  ;;  %p477_p3 = scmp.lt.s32.totalorder %s471_s10, %s471_s10 }
  0x2c   :  { %334 = vmatpush3.msra.mxu0 %v90_v2  ;;  %v81_v15 = vld [vmem:[#allocation6 + $0x28] sm:$0xff]  ;;  %v180_v16 = vld [vmem:[#allocation8 + $0x58] sm:$0xff]  ;;  %v80_v17 = vld [vmem:[#allocation6 + $0x20] sm:$0xff] }
  0x2d   :  { %335 = vmatprep.subr.mxu0 %v524_v0  ;;  %v79_v19 = vld [vmem:[#allocation6 + $0x18] sm:$0xff]  ;;  %v179_v20 = vld [vmem:[#allocation8 + $0x50] sm:$0xff]  ;;  %v77_v23 = vld [vmem:[#allocation6 + $0x8] sm:$0xff]  ;;  %p478_p4 = por %p477_p3, %p476_p2 }
  0x2e   :  { %336 = vmatpush3.msra.mxu0 %v89_v3  ;;  %369 = vmatpush3.xpose.msra.mxu1 %v183_v7  ;;  %v78_v21 = vld [vmem:[#allocation6 + $0x10] sm:$0xff]  ;;  %v293_v24 = vld [vmem:[#allocation3] ss:$0 sm:$0xff]  ;;  %v178_v25 = vld [vmem:[#allocation8 + $0x48] sm:$0xff] }
  0x2f   :  { %337 = vmatprep.subr.mxu0 %v524_v0  ;;  %370 = vmatprep.subr.mxu1 %v524_v0  ;;  %v76_v26 = vld [vmem:[#allocation6] sm:$0xff]  ;;  %vm72_vm1 = vcmp.eq.s32.totalorder %v67_v22, %v293_v24  ;;  %v176_v29 = vld [vmem:[#allocation8 + $0x38] sm:$0xff]  ;;  %v175_v30 = vld [vmem:[#allocation8 + $0x30] sm:$0xff]  ;;  %p479_p5 = pnand %p478_p4, %p472_p1 }
  0x30   :  { %338 = vmatpush3.msra.mxu0 %v88_v4  ;;  %v177_v27 = vld [vmem:[#allocation8 + $0x40] sm:$0xff]  ;;  %v174_v31 = vld [vmem:[#allocation8 + $0x28] sm:$0xff]  ;;  %v172_v33 = vld [vmem:[#allocation8 + $0x18] sm:$0xff] }
  0x31   :  { %339 = vmatprep.subr.mxu0 %v524_v0  ;;  %v173_v32 = vld [vmem:[#allocation8 + $0x20] sm:$0xff]  ;;  %v171_v34 = vld [vmem:[#allocation8 + $0x10] sm:$0xff]  ;;  %v170_v35 = vld [vmem:[#allocation8 + $0x8] sm:$0xff] }
  0x32   :  { %340 = vmatpush3.msra.mxu0 %v87_v6  ;;  %371 = vmatpush3.xpose.msra.mxu1 %v182_v10  ;;  %v169_v36 = vld [vmem:[#allocation8] sm:$0xff] }
  0x33   :  { %341 = vmatprep.subr.mxu0 %v524_v0  ;;  %372 = vmatprep.subr.mxu1 %v524_v0 }
  0x34   :  { %342 = vmatpush3.msra.mxu0 %v86_v8 }
  0x35   :  { %343 = vmatprep.subr.mxu0 %v524_v0 }
  0x36   :  { %344 = vmatpush3.msra.mxu0 %v85_v9  ;;  %373 = vmatpush3.xpose.msra.mxu1 %v181_v13 }
  0x37   :  { %345 = vmatprep.subr.mxu0 %v524_v0  ;;  %374 = vmatprep.subr.mxu1 %v524_v0 }
  0x38   :  { %346 = vmatpush3.msra.mxu0 %v84_v11 }
  0x39   :  { %347 = vmatprep.subr.mxu0 %v524_v0 }
  0x3a   :  { %348 = vmatpush3.msra.mxu0 %v83_v12  ;;  %375 = vmatpush3.xpose.msra.mxu1 %v180_v16 }
  0x3b   :  { %349 = vmatprep.subr.mxu0 %v524_v0  ;;  %376 = vmatprep.subr.mxu1 %v524_v0 }
  0x3c   :  { %350 = vmatpush3.msra.mxu0 %v82_v14 }
  0x3d   :  { %351 = vmatprep.subr.mxu0 %v524_v0 }
  0x3e   :  { %352 = vmatpush3.msra.mxu0 %v81_v15  ;;  %377 = vmatpush3.xpose.msra.mxu1 %v179_v20 }
  0x3f   :  { %353 = vmatprep.subr.mxu0 %v524_v0  ;;  %378 = vmatprep.subr.mxu1 %v524_v0 }
  0x40   :  { %354 = vmatpush3.msra.mxu0 %v80_v17 }
  0x41   :  { %355 = vmatprep.subr.mxu0 %v524_v0 }
  0x42   :  { %356 = vmatpush3.msra.mxu0 %v79_v19  ;;  %379 = vmatpush3.xpose.msra.mxu1 %v178_v25 }
  0x43   :  { %357 = vmatprep.subr.mxu0 %v524_v0  ;;  %380 = vmatprep.subr.mxu1 %v524_v0 }
  0x44   :  { %358 = vmatpush3.msra.mxu0 %v78_v21 }
  0x45   :  { %359 = vmatprep.subr.mxu0 %v524_v0 }
  0x46   :  { %360 = vmatpush3.msra.mxu0 %v77_v23  ;;  %381 = vmatpush3.xpose.msra.mxu1 %v177_v27 }
  0x47   :  { %361 = vmatprep.subr.mxu0 %v524_v0  ;;  %382 = vmatprep.subr.mxu1 %v524_v0 }
  0x48   :  { %362 = vmatpush3.msra.mxu0 %v76_v26 }
  0x49   :  { %364 = vmatmul.mubr.msk.f32.vlgmr.msra.gmra.mxu0 %vm72_vm1, %v526_v28 }
  0x4a   :  { %383 = vmatpush3.xpose.msra.mxu1 %v176_v29 }
  0x4b   :  { %384 = vmatprep.subr.mxu1 %v524_v0 }
  0x4e   :  { %385 = vmatpush3.xpose.msra.mxu1 %v175_v30 }
  0x4f   :  { %386 = vmatprep.subr.mxu1 %v524_v0 }
  0x52   :  { %387 = vmatpush3.xpose.msra.mxu1 %v174_v31 }
  0x53   :  { %388 = vmatprep.subr.mxu1 %v524_v0 }
  0x56   :  { %389 = vmatpush3.xpose.msra.mxu1 %v173_v32 }
  0x57   :  { %390 = vmatprep.subr.mxu1 %v524_v0 }
  0x5a   :  { %391 = vmatpush3.xpose.msra.mxu1 %v172_v33 }
  0x5b   :  { %392 = vmatprep.subr.mxu1 %v524_v0 }
  0x5e   :  { %393 = vmatpush3.xpose.msra.mxu1 %v171_v34 }
  0x5f   :  { %394 = vmatprep.subr.mxu1 %v524_v0 }
  0x62   :  { %395 = vmatpush3.xpose.msra.mxu1 %v170_v35 }
  0x63   :  { %396 = vmatprep.subr.mxu1 %v524_v0 }
  0x66   :  { %397 = vmatpush3.xpose.msra.mxu1 %v169_v36 }
 0x109   :  { %v158_v37 = vpop.f32.mrf.mxu0 }
 0x10a   :  { %168 = vst [vmem:[#allocation10] sm:$0xff] %v158_v37  ;;  %399 = vmatmul.mubr.f32.vlgmr.msra.gmra.mxu1 %v158_v37 }
 0x10b   :  { %v365_v38 = vpop.f32.mrf.mxu0 }
 0x10c   :  { %482 = shalt.err (!%p479_p5)
}
 0x10d   :  { %282 = dma.vmem_to_hbm [thread:$0]  %s280_s2, 128, %s616_s5, [#allocation11]   ;;  %v296_v39 = vld [vmem:[%s614_s3] ss:$0 sm:$0xff] }
 0x10e   :  { %s528_s15 = smov [#allocation9]  }
 0x10f   :  { %s269_s16 = sshll.u32 %s528_s15, 4  ;;  %s270_s16 = int_to_ptr.vmem [resolvable:$true] %s269_s16 }
 0x110   :  { %s491_s17 = scalar_lea.vmem %s270_s16, 128  ;;  %p496_p7 = scmp.lt.s32.totalorder %s270_s16, %s270_s16 }
 0x111   :  { %p492_p6 = scmp.ne.s32.totalorder %s270_s16, %s491_s17  ;;  %p497_p8 = scmp.lt.s32.totalorder %s491_s17, %s491_s17 }
 0x113   :  { %p498_p9 = por %p497_p8, %p496_p7 }
 0x115   :  { %p499_p10 = pnand %p498_p9, %p492_p6 }
 0x1ca   :  { %v258_v40 = vpop.f32.mrf.mxu1 }
 0x1cb   :  { %v259_v41 = vadd.f32 %v296_v39, %v258_v40 }
 0x1cc   :  { %v400_v42 = vpop.f32.mrf.mxu1 }
 0x1cd   :  { %262 = vst [vmem:[#allocation9] sm:$0xff] %v259_v41 }
 0x1ce   :  { %502 = shalt.err (!%p499_p10)
}
 0x1cf   :  { %272 = dma.vmem_to_hbm [thread:$0]  %s270_s16, 128, %s615_s4, [#allocation5]  }
 0x1d0   :  { %515 = dma.done.wait [#allocation5], 128  }
 0x1d1   :  { %516 = vsyncadd [#allocation5], 4294967168 }
 0x1d2   :  { %517 = dma.done.wait [#allocation11], 128  }
 0x1d3   :  { %518 = vsyncadd [#allocation11], 4294967168 }
 0x1d4   :  { %289 = vsyncpa [#allocation4], 1 }
 0x1d5   :  { %290 = vsyncpa [#allocation7], 1 }
 0x1d6   :  { %291 = vsyncpa [#allocation5], 1 }
 0x1d7   :  { %292 = vsyncpa [#allocation11], 1 }

</bundles_post_ra>
